<compile_context>
chip_gen: v6e
topology: v6e:2x2x1
jax: 0.10.0
libtpu: 0.0.40
codegen_flags: <defaults>
</compile_context>

<pallas_src>
from functools import partial

import jax
import jax.numpy as jnp
from jax.experimental import pallas as pl
from jax.experimental.pallas import tpu as pltpu


def _round_up(x, m):
    return -(-x // m) * m


def _pick_tile(n_pad, want, quantum=128):
    """Largest multiple of `quantum` that is <= min(want, n_pad) and divides n_pad."""
    t = max(quantum, min(want, n_pad))
    t = (t // quantum) * quantum
    while t > quantum and n_pad % t != 0:
        t -= quantum
    return t


# -----------------------------------------------------------------------------
# Kernel 1: one propagation hop   h_out = adj_i @ h_in
#   grid = (row tiles [parallel], contraction tiles [arbitrary])
#   adj streamed as (TM, TC) blocks; h_in fed as the matching (TC, F_in) block.
# -----------------------------------------------------------------------------
def _propagate_kernel(adj_ref, hin_ref, hout_ref, acc_ref):
    c = pl.program_id(1)

    @pl.when(c == 0)
    def _():
        acc_ref[...] = jnp.zeros_like(acc_ref)

    acc_ref[...] += jnp.dot(adj_ref[...], hin_ref[...],
                            preferred_element_type=jnp.float32)

    @pl.when(c == pl.num_programs(1) - 1)
    def _():
        hout_ref[...] = acc_ref[...].astype(hout_ref.dtype)


# -----------------------------------------------------------------------------
# Kernel 2: last hop + fused concat-linear
#   acc      = adj_{k-1}[row, :] @ h_{k-1}                (contraction over c)
#   out[row] = sum_i feats_i[row] @ W_i + acc_bf16 @ W_k + b
#   W is pre-split per hop, zero-padded to a 128-lane multiple -> lane-dense stores.
# -----------------------------------------------------------------------------
def _final_kernel(*refs, k):
    adj_ref = refs[0]
    hprev_ref = refs[1]
    feat_refs = refs[2:2 + k]
    w_ref = refs[2 + k]        # (k+1, F_in, F_out_pad) bf16
    b_ref = refs[3 + k]        # (1, F_out_pad) f32
    o_ref = refs[4 + k]
    acc_ref = refs[5 + k]

    c = pl.program_id(1)

    @pl.when(c == 0)
    def _():
        acc_ref[...] = jnp.zeros_like(acc_ref)

    acc_ref[...] += jnp.dot(adj_ref[...], hprev_ref[...],
                            preferred_element_type=jnp.float32)

    @pl.when(c == pl.num_programs(1) - 1)
    def _():
        # Chained accumulation: a single live (TM, F_out_pad) f32 value instead of
        # several materialized temporaries (keeps epilogue spill pressure low).
        out = jnp.dot(feat_refs[0][...], w_ref[0],
                      preferred_element_type=jnp.float32)
        for i in range(1, k):
            out = out + jnp.dot(feat_refs[i][...], w_ref[i],
                                preferred_element_type=jnp.float32)
        out = out + jnp.dot(acc_ref[...].astype(jnp.bfloat16), w_ref[k],
                            preferred_element_type=jnp.float32)
        o_ref[...] = (out + b_ref[...]).astype(o_ref.dtype)


def tagconv_forward(x, adj, weight, bias, *, k, tm=1024, tc=2048,
                    adj_buffers=2, vmem_limit_bytes=32 * 1024 * 1024):
    """TAGConv forward. x:(N,F_in)  adj:(K,N,N)  weight:(F_out, F_in*(K+1))  bias:(F_out,)."""
    n, f_in = x.shape
    f_out = weight.shape[0]
    assert k >= 1, "this Pallas implementation expects k >= 1"
    assert weight.shape == (f_out, f_in * (k + 1))
    assert adj.shape == (k, n, n)

    # Pad N to a multiple of 256 so tiles never fall back to a full-array block and the
    # (8, 128) layout constraint always holds; padded rows/cols are zero and sliced off.
    n_pad = _round_up(n, 256)
    tc = _pick_tile(n_pad, max(tc, 512))    # adj DMA rows >= 1 KiB contiguous (bf16)
    tm = _pick_tile(n_pad, tm)
    if n_pad // tm < 2:                     # >= 2 row tiles -> both TensorCores on v7x
        tm = _pick_tile(n_pad, n_pad // 2)
    grid = (n_pad // tm, n_pad // tc)

    f_out_pad = _round_up(f_out, 128)       # lane-dense (unmasked) output stores

    # bf16 for the HBM-dominant operands; accumulation stays f32 inside the kernels.
    # TODO(synk): on v7x the adj stream could be quantized further to fp8 (int8 on v6e)
    # for up to ~2x on the bandwidth-bound hops, gated on an accuracy check.
    pad_n = n_pad - n
    x_bf = jnp.pad(x, ((0, pad_n), (0, 0))).astype(jnp.bfloat16)
    adj_bf = jnp.pad(adj, ((0, 0), (0, pad_n), (0, pad_n))).astype(jnp.bfloat16)

    # y = concat(feats) @ W.T + b.  Pre-split W.T into per-hop (F_in, F_out) blocks,
    # pad output lanes to a 128 multiple, keep W in bf16 (fast MXU path, no f32 casts).
    w_split = weight.T.reshape(k + 1, f_in, f_out)
    w_pad = jnp.zeros((k + 1, f_in, f_out_pad), jnp.bfloat16)
    w_pad = w_pad.at[:, :, :f_out].set(w_split.astype(jnp.bfloat16))
    b_pad = jnp.zeros((1, f_out_pad), jnp.float32)
    b_pad = b_pad.at[:, :f_out].set(bias.astype(jnp.float32).reshape(1, f_out))

    cparams = pltpu.CompilerParams(
        dimension_semantics=("parallel", "arbitrary"),   # rows shard across TCs (v7x)
        vmem_limit_bytes=vmem_limit_bytes)

    adj_spec = pl.BlockSpec((tm, tc), lambda r, c: (r, c),
                            pipeline_mode=pl.Buffered(adj_buffers))
    # Feature operand fed per contraction step: caps its VMEM footprint at
    # ~tc x 128 lanes per buffer (vs a lane-padded (N, F_in) resident buffer).
    hin_spec = pl.BlockSpec((tc, f_in), lambda r, c: (c, 0))
    row_feat_spec = pl.BlockSpec((tm, f_in), lambda r, c: (r, 0))

    # ---- hops 1 .. k-1 : h_i = adj[i-1] @ h_{i-1} ------------------------------
    feats = [x_bf]
    h = x_bf
    for i in range(k - 1):
        h = pl.pallas_call(
            _propagate_kernel,
            out_shape=jax.ShapeDtypeStruct((n_pad, f_in), jnp.bfloat16),
            grid=grid,
            in_specs=[adj_spec, hin_spec],
            out_specs=row_feat_spec,
            scratch_shapes=[pltpu.VMEM((tm, f_in), jnp.float32)],
            compiler_params=cparams,
            cost_estimate=pl.CostEstimate(
                flops=2 * n_pad * n_pad * f_in,
                transcendentals=0,
                bytes_accessed=2 * n_pad * n_pad
                               + 2 * grid[0] * n_pad * f_in
                               + 2 * n_pad * f_in),
        )(adj_bf[i], h)
        feats.append(h)

    # ---- hop k + fused concat-linear --------------------------------------------
    # Hop features enter as separate row-blocked inputs: no wrapper-side concat buffer.
    out_pad = pl.pallas_call(
        partial(_final_kernel, k=k),
        out_shape=jax.ShapeDtypeStruct((n_pad, f_out_pad), x.dtype),
        grid=grid,
        in_specs=([adj_spec, hin_spec]
                  + [row_feat_spec] * k
                  + [pl.BlockSpec((k + 1, f_in, f_out_pad), lambda r, c: (0, 0, 0)),
                     pl.BlockSpec((1, f_out_pad), lambda r, c: (0, 0))]),
        out_specs=pl.BlockSpec((tm, f_out_pad), lambda r, c: (r, 0)),
        scratch_shapes=[pltpu.VMEM((tm, f_in), jnp.float32)],
        compiler_params=cparams,
        cost_estimate=pl.CostEstimate(
            flops=2 * n_pad * n_pad * f_in
                  + 2 * n_pad * (k + 1) * f_in * f_out_pad,
            transcendentals=0,
            bytes_accessed=2 * n_pad * n_pad
                           + 2 * (grid[0] + k) * n_pad * f_in
                           + 4 * n_pad * f_out_pad
                           + 2 * w_pad.size + 4 * b_pad.size),
    )(adj_bf[k - 1], h, *feats, w_pad, b_pad)

    # TODO(synk): batch_norm / activation / dropout are identity under the module
    # defaults (batch_norm=False, activation=None, dropout=0.0).
    return out_pad[:n, :f_out]


# ------------------------------- references ----------------------------------
def tagconv_reference(x, adj, weight, bias, *, k):
    """Pure-f32 reference mirroring the PyTorch forward exactly."""
    fstack = [x]
    for i in range(k):
        fstack.append(jnp.dot(adj[i], fstack[-1], precision=jax.lax.Precision.HIGHEST))
    h = jnp.concatenate(fstack, axis=-1)
    return jnp.dot(h, weight.T, precision=jax.lax.Precision.HIGHEST) + bias


def tagconv_reference_bf16(x, adj, weight, bias, *, k):
    """Mirrors the kernel's quantization policy: bf16 adj / features / weight with f32
    accumulation everywhere and an f32 bias add."""
    xb = x.astype(jnp.bfloat16)
    ab = adj.astype(jnp.bfloat16)
    feats = [xb]
    h = xb
    for i in range(k):
        h = jnp.dot(ab[i], h, preferred_element_type=jnp.float32).astype(jnp.bfloat16)
        feats.append(h)
    hcat = jnp.concatenate(feats, axis=-1)
    out = jnp.dot(hcat, weight.T.astype(jnp.bfloat16),
                  preferred_element_type=jnp.float32)
    return out + bias.astype(jnp.float32)


if __name__ == "__main__":
    # Small, module-consistent shapes (tile selection clamps to the padded N;
    # large inputs automatically get the big 4 MiB adj tiles).
    N = 256           # number of graph nodes
    F_IN = 16         # in_features
    F_OUT = 32        # out_features
    K = 2             # number of hops

    key = jax.random.PRNGKey(0)
    kx, ka, kw, kb = jax.random.split(key, 4)

    # Node features.
    x = jax.random.normal(kx, (N, F_IN), dtype=jnp.float32)

    # Dense, row-normalized random adjacency stack (stands in for the sparse
    # adj[i] the PyTorch module consumes via torch.spmm).
    a_raw = (jax.random.uniform(ka, (K, N, N)) < 0.05).astype(jnp.float32)
    a_raw = a_raw + jnp.eye(N)[None, :, :]                     # self-loops
    deg = jnp.sum(a_raw, axis=-1, keepdims=True)
    adj = a_raw / jnp.maximum(deg, 1.0)

    # Deterministic init matching nn.Linear(F_IN*(K+1), F_OUT) with xavier_normal_.
    fan_in = F_IN * (K + 1)
    gain = jnp.sqrt(2.0)                                       # gain('relu')
    std = gain * jnp.sqrt(2.0 / (fan_in + F_OUT))
    weight = std * jax.random.normal(kw, (F_OUT, fan_in), dtype=jnp.float32)
    bound = 1.0 / jnp.sqrt(fan_in)
    bias = jax.random.uniform(kb, (F_OUT,), minval=-bound, maxval=bound,
                              dtype=jnp.float32)

    out = tagconv_forward(x, adj, weight, bias, k=K)
    out = jax.block_until_ready(out)
    assert out.shape == (N, F_OUT)

    # Tight check vs. a reference applying the identical bf16 quantization policy.
    ref_q = tagconv_reference_bf16(x, adj, weight, bias, k=K)
    assert jnp.allclose(out, ref_q, atol=5e-3, rtol=5e-3), \
        "mismatch vs bf16-mirrored reference"

    # Loose check vs. exact f32 module semantics (difference is only bf16 drift).
    ref = tagconv_reference(x, adj, weight, bias, k=K)
    assert jnp.allclose(out, ref, atol=5e-2, rtol=5e-2), "mismatch vs f32 reference"

    print("KERNEL_OK")
</pallas_src>

<mosaic_0001>
module attributes {stable_mosaic.version = 11 : i64} {
  func.func @_propagate_kernel(%arg0: i32, %arg1: i32, %arg2: memref<128x256xbf16, #tpu.memory_space<vmem>>, %arg3: memref<256x16xbf16, #tpu.memory_space<vmem>>, %arg4: memref<128x16xbf16, #tpu.memory_space<vmem>>, %arg5: memref<128x16xf32, #tpu.memory_space<vmem>>) attributes {dimension_semantics = [#tpu.dimension_semantics<parallel>, #tpu.dimension_semantics<arbitrary>], iteration_bounds = array<i64: 2, 1>, scalar_prefetch = 0 : i64, scratch_operands = 1 : i64, tpu.core_type = #tpu.core_type<tc>, window_params = [{pipeline_mode = #tpu.pipeline_mode<double_buffered>, transform_indices = @transform_0, window_bounds = array<i64: 128, 256>}, {transform_indices = @transform_1, window_bounds = array<i64: 256, 16>}, {transform_indices = @transform_2, window_bounds = array<i64: 128, 16>}]} {
    %c0_i32 = arith.constant 0 : i32
    %0 = arith.cmpi eq, %arg1, %c0_i32 : i32
    %1 = arith.extui %0 : i1 to i32
    %c0_i32_0 = arith.constant 0 : i32
    %2 = arith.cmpi ne, %1, %c0_i32_0 : i32
    scf.if %2 {
      %cst_10 = arith.constant 0.000000e+00 : f32
      %12 = vector.broadcast %cst_10 : f32 to vector<128x16xf32>
      %c0_11 = arith.constant 0 : index
      %c0_12 = arith.constant 0 : index
      %13 = vector.load %arg5[%c0_11, %c0_12] : memref<128x16xf32, #tpu.memory_space<vmem>>, vector<128x16xf32>
      tpu.vector_store %arg5[%c0_11, %c0_12], %12 {strides = array<i32>} : memref<128x16xf32, #tpu.memory_space<vmem>>, vector<128x16xf32>,
    } else {
    }
    %c0 = arith.constant 0 : index
    %c0_1 = arith.constant 0 : index
    %3 = vector.load %arg5[%c0, %c0_1] : memref<128x16xf32, #tpu.memory_space<vmem>>, vector<128x16xf32>
    %c0_2 = arith.constant 0 : index
    %c0_3 = arith.constant 0 : index
    %4 = vector.load %arg2[%c0_2, %c0_3] : memref<128x256xbf16, #tpu.memory_space<vmem>>, vector<128x256xbf16>
    %c0_4 = arith.constant 0 : index
    %c0_5 = arith.constant 0 : index
    %5 = vector.load %arg3[%c0_4, %c0_5] : memref<256x16xbf16, #tpu.memory_space<vmem>>, vector<256x16xbf16>
    %cst = arith.constant dense<0.000000e+00> : vector<128x16xf32>
    %6 = tpu.matmul %4, %5, %cst {dimension_numbers = #tpu.dot_dimension_numbers<[1], [0], [0], [1], [0, 0, 1, 1], [], []>} : vector<128x256xbf16>, vector<256x16xbf16>, vector<128x16xf32> -> vector<128x16xf32>
    %7 = arith.addf %3, %6 : vector<128x16xf32>
    %c0_6 = arith.constant 0 : index
    %c0_7 = arith.constant 0 : index
    %8 = vector.load %arg5[%c0_6, %c0_7] : memref<128x16xf32, #tpu.memory_space<vmem>>, vector<128x16xf32>
    tpu.vector_store %arg5[%c0_6, %c0_7], %7 {strides = array<i32>} : memref<128x16xf32, #tpu.memory_space<vmem>>, vector<128x16xf32>,
    %c0_i32_8 = arith.constant 0 : i32
    %9 = arith.cmpi eq, %arg1, %c0_i32_8 : i32
    %10 = arith.extui %9 : i1 to i32
    %c0_i32_9 = arith.constant 0 : i32
    %11 = arith.cmpi ne, %10, %c0_i32_9 : i32
    scf.if %11 {
      %c0_10 = arith.constant 0 : index
      %c0_11 = arith.constant 0 : index
      %12 = vector.load %arg5[%c0_10, %c0_11] : memref<128x16xf32, #tpu.memory_space<vmem>>, vector<128x16xf32>
      %13 = arith.truncf %12 : vector<128x16xf32> to vector<128x16xbf16>
      %c0_12 = arith.constant 0 : index
      %c0_13 = arith.constant 0 : index
      %14 = vector.load %arg4[%c0_12, %c0_13] : memref<128x16xbf16, #tpu.memory_space<vmem>>, vector<128x16xbf16>
      tpu.vector_store %arg4[%c0_12, %c0_13], %13 {strides = array<i32>} : memref<128x16xbf16, #tpu.memory_space<vmem>>, vector<128x16xbf16>,
    } else {
    }
    return
  }
  func.func @transform_0(%arg0: i32, %arg1: i32) -> (i32, i32) {
    %c0_i32 = arith.constant 0 : i32
    return %arg0, %arg1 : i32, i32
  }
  func.func @transform_1(%arg0: i32, %arg1: i32) -> (i32, i32) {
    %c0_i32 = arith.constant 0 : i32
    %c0_i32_0 = arith.constant 0 : i32
    return %arg1, %c0_i32 : i32, i32
  }
  func.func @transform_2(%arg0: i32, %arg1: i32) -> (i32, i32) {
    %c0_i32 = arith.constant 0 : i32
    %c0_i32_0 = arith.constant 0 : i32
    return %arg0, %c0_i32 : i32, i32
  }
}

</mosaic_0001>

<bundles_post_ra>
// kernel: tpu_custom_call.1
= control target key start
LH: loop header
LB: loop body
LE: loop exit
PB: predicated region body
PF: predicated region fallthrough
CT: control target
= control target key end

     0   :  { %7 = vsyncpa [#allocation4], 0  ;;  %s1377_s0 = inlined_call_operand.hbm [shape: bf16[256,256], index: 0, kind: input, shape index: {}]   ;;  %s1378_s1 = inlined_call_operand.vmem [shape: bf16[256,16], index: 1, kind: input, shape index: {}]   ;;  %s1379_s2 = inlined_call_operand.vmem [shape: bf16[256,16], index: 2, kind: output, shape index: {}]  }
   0x1   :  { %9 = vsyncpa [#allocation4 + $0x1], 0  ;;  %s1150_s9 = smov 0   ;;  %s1152_s10 = smov 0  }
   0x2   :  { %s1154_s11 = smov 0   ;;  %s1156_s12 = smov 0  }
   0x3   :  { %s1158_s13 = smov 0   ;;  %s1160_s14 = smov 0  }
   0x4 LB: > { %s792_s15 = sadd.s32 4294967295, %s1129_s14   ;;  %s27_s16 = sadd.s32 1, %s1125_s13  ;;  %s1129_s14 = sphi %s1160_s14, %s15_s14   ;;  %s1125_s13 = sphi %s1158_s13, %s1387_s13   ;;  %s1121_s12 = sphi %s1156_s12, %s1386_s12   ;;  %s1117_s11 = sphi %s1154_s11, %s1385_s11   ;;  %s1113_s10 = sphi %s1152_s10, %s1384_s10   ;;  %s1109_s9 = sphi %s1150_s9, %s1383_s9  }
   0x5   : > { %p29_p0 = scmp.ge.s32.totalorder %s27_s16, 2  ;;  %s36_s17 = sadd.s32 1, %s1117_s11 }
   0x6   : > { %p43_p1 = scmp.ne.s32.totalorder %s1117_s11, %s1113_s10  ;;  %p44_p2 = scmp.eq.s32.totalorder %s1129_s14, 0 }
   0x7   : > { %s1389_s16 = smov (%p29_p0, %s27_s16), 0  ;;  %p49_p4 = scmp.ne.s32.totalorder %s1113_s10, %s1109_s9 }
   0x8   : > { %p1186_p3 = por %p44_p2, %p43_p1  ;;  %s31_s19 = ssub.s32 %s1125_s13, %s1389_s16 }
   0x9   : > { %p50_p5 = scmp.eq.s32.totalorder %s792_s15, 0  ;;  %p34_p6 = scmp.eq.s32.totalorder %s31_s19, 0 }
   0xa   : > { %p959_p8 = scmp.lt.s32.totalorder %s1129_s14, 2  ;;  %s134_s22 = sand.u32 1, %s1117_s11  }
   0xb   : > { %p1193_p7 = por %p50_p5, %p49_p4  ;;  %s856_s23 = sshll.u32 %s1125_s13, 11 }
   0xc   : > { %s1199_s21 = scalar_select %p34_p6, %s1117_s11, %s36_s17  }
   0xd   : > { %s797_s24 = sshll.u32 %s134_s22, 7  ;;  %s147_s27 = scalar_lea.hbm %s1377_s0, %s856_s23 }
   0xe   : > { %s138_s28 = scalar_lea.vmem [#allocation3], %s797_s24  ;;  %p1208_p9 = pnand %p959_p8, %p1186_p3 }
   0xf   : > { %s148_s29 = sshll.u32 %s138_s28, 4  ;;  %s135_s3 = scalar_lea.sflag [#allocation4], %s134_s22  ;;  %s149_s29 = int_to_ptr.vmem [resolvable:$true] %s148_s29 }
  0x10   : > { %p1053_p10 = pneg %p1208_p9  ;;  %s1064_s4 = scalar_lea.vmem %s149_s29, 2048 }
  0x11   : > { %p1065_p11 = scmp.ne.s32.totalorder %s149_s29, %s1064_s4  ;;  %s1131_s5 = smov [#allocation3]  }
  0x12   : > { %s1069_s6 = sshll.u32 %s1131_s5, 4  ;;  %s1070_s6 = int_to_ptr.vmem [resolvable:$false] %s1069_s6 }
  0x13   : > { %p1067_p12 = pnand %p1065_p11, %p1053_p10  ;;  %s1071_s7 = scalar_lea.vmem %s1070_s6, 4096 }
  0x14   : > { %p1072_p0 = scmp.lt.s32.totalorder %s149_s29, %s1070_s6  ;;  %p1073_p1 = scmp.lt.s32.totalorder %s1071_s7, %s1064_s4 }
  0x15   : > { %p1068_p13 = pneg %p1067_p12 }
  0x16   : > { %p1074_p2 = por %p1073_p1, %p1072_p0 }
  0x18   : > { %p1075_p3 = pnand %p1074_p2, %p1068_p13 }
  0x1a   : > { %1078 = shalt.err (!%p1075_p3)
}
  0x1b   : > { %s1132_s8 = smov 128   ;;  %s1133_s9 = smov 8  }
  0x1c   : > { %958 = dma.hbm_to_vmem [thread:$0]  (!%p1208_p9), %s147_s27, 2048, %s149_s29, %s135_s3, %s1132_s8, %s1132_s8, %s1133_s9  }
  0x1d   : > { %p801_p4 = scmp.ge.s32.totalorder %s1129_s14, 1  ;;  %p156_p5 = scmp.lt.s32.totalorder %s1129_s14, 3 }
  0x1f   : > { %p157_p6 = pnand %p801_p4, %p156_p5 }
  0x20   : > { %s162_s15 = sand.u32 (!%p157_p6), 1, %s1113_s10  }
  0x21   : > { %160 = sbr.rel (%p157_p6) target bundleno = 311 (0x137), region = 28  ;;  %s802_s17 = sshll.u32 (!%p157_p6), %s162_s15, 7 }
  0x22   : > { %s163_s18 = scalar_lea.sflag (!%p157_p6), [#allocation4], %s162_s15  ;;  %s1219_s19 = scalar_lea.vmem (!%p157_p6), [#allocation3], %s802_s17 }
  0x26   : > { %1104 = dma.done.wait (%p1193_p7), %s163_s18, 2048  }
  0x27   : > { %1106 = vsyncadd (%p1193_p7), %s163_s18, 4294965248  ;;  %v1011_v0 = vld [vmem:[%s1378_s1 + $0x78] sm:$0xff]   ;;  %v1013_v2 = vld [vmem:[%s1378_s1 + $0x70] sm:$0xff]   ;;  %vm211_vm0 = vcmask 130048   ;;  %v1134_v32 = vmov 0.0   ;;  %vm681_vm1 = vcmask 125952  }
  0x28   : > { %v1012_v1 = vld [vmem:[%s1378_s1 + $0x38] sm:$0xff]   ;;  %873 = vmatprep.subr.bf16.mxu0 %v1011_v0  ;;  %937 = vmatprep.subr.bf16.mxu1 %v1011_v0  ;;  %v1014_v3 = vld [vmem:[%s1378_s1 + $0x30] sm:$0xff]   ;;  %v1015_v4 = vld [vmem:[%s1378_s1 + $0x68] sm:$0xff]   ;;  %212 = vst.msk [vmem:[#allocation2] sm:$0xff] %vm211_vm0, %v1134_v32 }
  0x29   : > { %874 = vmatpush3.bf16.msra.mxu0 %v1012_v1  ;;  %945 = vmatpush3.bf16.msra.mxu1 %v1012_v1  ;;  %v1016_v5 = vld [vmem:[%s1378_s1 + $0x28] sm:$0xff]   ;;  %v1017_v6 = vld [vmem:[%s1378_s1 + $0x60] sm:$0xff]   ;;  %v1019_v8 = vld [vmem:[%s1378_s1 + $0x58] sm:$0xff]   ;;  %213 = vst.msk [vmem:[#allocation2 + $0x8] sm:$0xff] %vm211_vm0, %v1134_v32 }
  0x2a   : > { %875 = vmatprep.subr.bf16.mxu0 %v1013_v2  ;;  %938 = vmatprep.subr.bf16.mxu1 %v1013_v2  ;;  %v1018_v7 = vld [vmem:[%s1378_s1 + $0x20] sm:$0xff]   ;;  %v1020_v9 = vld [vmem:[%s1378_s1 + $0x18] sm:$0xff]   ;;  %v1021_v10 = vld [vmem:[%s1378_s1 + $0x50] sm:$0xff]   ;;  %214 = vst.msk [vmem:[#allocation2 + $0x10] sm:$0xff] %vm211_vm0, %v1134_v32 }
  0x2b   : > { %v1029_v11 = vld [vmem:[%s1219_s19 + $0x4] ss:$8 sps:$4 sm:$0xff]   ;;  %v1022_v13 = vld [vmem:[%s1378_s1 + $0x10] sm:$0xff]   ;;  %v1027_v18 = vld [vmem:[%s1219_s19] ss:$8 sps:$4 sm:$0xff]   ;;  %215 = vst.msk [vmem:[#allocation2 + $0x18] sm:$0xff] %vm211_vm0, %v1134_v32 }
  0x2c   : > { %v1032_v12 = vld [vmem:[%s1219_s19 + $0x44] ss:$8 sps:$4 sm:$0xff]   ;;  %500 = vmatprep.mubr.bf16.mxu0 %v1029_v11  ;;  %v1030_v19 = vld [vmem:[%s1219_s19 + $0x40] ss:$8 sps:$4 sm:$0xff]   ;;  %v1033_v20 = vld [vmem:[%s1219_s19 + $0x14] ss:$8 sps:$4 sm:$0xff]  }
  0x2d   : > { %876 = vmatpush3.bf16.msra.mxu0 %v1014_v3  ;;  %946 = vmatpush3.bf16.msra.mxu1 %v1014_v3  ;;  %v1023_v14 = vld [vmem:[%s1378_s1 + $0x48] sm:$0xff]   ;;  %v1025_v16 = vld [vmem:[%s1378_s1 + $0x40] sm:$0xff]   ;;  %v1035_v21 = vld [vmem:[%s1219_s19 + $0x54] ss:$8 sps:$4 sm:$0xff]   ;;  %216 = vst.msk [vmem:[#allocation2 + $0x20] sm:$0xff] %vm211_vm0, %v1134_v32 }
  0x2e   : > { %877 = vmatprep.subr.bf16.mxu0 %v1015_v4  ;;  %939 = vmatprep.subr.bf16.mxu1 %v1015_v4  ;;  %v1024_v15 = vld [vmem:[%s1378_s1 + $0x8] sm:$0xff]   ;;  %v1026_v17 = vld [vmem:[%s1378_s1] sm:$0xff]   ;;  %v1037_v22 = vld [vmem:[%s1219_s19 + $0x10] ss:$8 sps:$4 sm:$0xff]   ;;  %217 = vst.msk [vmem:[#allocation2 + $0x28] sm:$0xff] %vm211_vm0, %v1134_v32 }
  0x2f   : > { %532 = vmatprep.mubr.bf16.mxu1 %v1032_v12  ;;  %v1038_v23 = vld [vmem:[%s1219_s19 + $0x50] ss:$8 sps:$4 sm:$0xff]   ;;  %v1039_v24 = vld [vmem:[%s1219_s19 + $0x24] ss:$8 sps:$4 sm:$0xff]   ;;  %v1043_v26 = vld [vmem:[%s1219_s19 + $0x20] ss:$8 sps:$4 sm:$0xff]  }
  0x30   : > { %v1041_v25 = vld [vmem:[%s1219_s19 + $0x64] ss:$8 sps:$4 sm:$0xff]   ;;  %v1044_v27 = vld [vmem:[%s1219_s19 + $0x60] ss:$8 sps:$4 sm:$0xff]   ;;  %v1045_v28 = vld [vmem:[%s1219_s19 + $0x34] ss:$8 sps:$4 sm:$0xff]  }
  0x31   : > { %878 = vmatpush3.bf16.msra.mxu0 %v1016_v5  ;;  %947 = vmatpush3.bf16.msra.mxu1 %v1016_v5  ;;  %v1047_v29 = vld [vmem:[%s1219_s19 + $0x74] ss:$8 sps:$4 sm:$0xff]   ;;  %v1049_v30 = vld [vmem:[%s1219_s19 + $0x30] ss:$8 sps:$4 sm:$0xff]   ;;  %218 = vst.msk [vmem:[#allocation2 + $0x30] sm:$0xff] %vm211_vm0, %v1134_v32  ;;  %219 = vst.msk [vmem:[#allocation2 + $0x38] sm:$0xff] %vm211_vm0, %v1134_v32 }
  0x32   : > { %879 = vmatprep.subr.bf16.mxu0 %v1017_v6  ;;  %940 = vmatprep.subr.bf16.mxu1 %v1017_v6  ;;  %v1050_v31 = vld [vmem:[%s1219_s19 + $0x70] ss:$8 sps:$4 sm:$0xff]   ;;  %220 = vst.msk [vmem:[#allocation2 + $0x40] sm:$0xff] %vm211_vm0, %v1134_v32  ;;  %221 = vst.msk [vmem:[#allocation2 + $0x48] sm:$0xff] %vm211_vm0, %v1134_v32  ;;  %s803_s19 = sshll.u32 %s1121_s12, 4  ;;  %v228_v35 = vld [vmem:[#allocation2] sm:$0xff] }
  0x33   : > { %222 = vst.msk [vmem:[#allocation2 + $0x50] sm:$0xff] %vm211_vm0, %v1134_v32  ;;  %223 = vst.msk [vmem:[#allocation2 + $0x58] sm:$0xff] %vm211_vm0, %v1134_v32  ;;  %p201_p7 = scmp.lt.s32.totalorder %s803_s19, 31  ;;  %v229_v45 = vld [vmem:[#allocation2 + $0x8] sm:$0xff]  ;;  %v230_v55 = vld [vmem:[#allocation2 + $0x10] sm:$0xff] }
  0x34   : > { %224 = vst.msk [vmem:[#allocation2 + $0x60] sm:$0xff] %vm211_vm0, %v1134_v32  ;;  %225 = vst.msk [vmem:[#allocation2 + $0x68] sm:$0xff] %vm211_vm0, %v1134_v32  ;;  %v231_v1 = vld [vmem:[#allocation2 + $0x18] sm:$0xff] }
  0x35   : > { %880 = vmatpush3.bf16.msra.mxu0 %v1018_v7  ;;  %948 = vmatpush3.bf16.msra.mxu1 %v1018_v7  ;;  %226 = vst.msk [vmem:[#allocation2 + $0x70] sm:$0xff] %vm211_vm0, %v1134_v32  ;;  %227 = vst.msk [vmem:[#allocation2 + $0x78] sm:$0xff] %vm211_vm0, %v1134_v32  ;;  %s1391_s19 = smov (!%p201_p7, %s803_s19), 31 }
  0x36   : > { %881 = vmatprep.subr.bf16.mxu0 %v1019_v8  ;;  %941 = vmatprep.subr.bf16.mxu1 %v1019_v8  ;;  %s804_s12 = sshll.u32 %s1391_s19, 2 }
  0x37   : > { %s1313_s7 = scalar_lea.vmem %s1379_s2, %s804_s12 }
  0x39   : > { %882 = vmatpush3.bf16.msra.mxu0 %v1020_v9  ;;  %949 = vmatpush3.bf16.msra.mxu1 %v1020_v9  ;;  %v236_v37 = vld [vmem:[#allocation2 + $0x40] sm:$0xff]  ;;  %v237_v47 = vld [vmem:[#allocation2 + $0x48] sm:$0xff] }
  0x3a   : > { %883 = vmatprep.subr.bf16.mxu0 %v1021_v10  ;;  %942 = vmatprep.subr.bf16.mxu1 %v1021_v10  ;;  %v238_v57 = vld [vmem:[#allocation2 + $0x50] sm:$0xff]  ;;  %v239_v5 = vld [vmem:[#allocation2 + $0x58] sm:$0xff] }
  0x3d   : > { %884 = vmatpush3.bf16.msra.mxu0 %v1022_v13  ;;  %950 = vmatpush3.bf16.msra.mxu1 %v1022_v13 }
  0x3e   : > { %885 = vmatprep.subr.bf16.mxu0 %v1023_v14  ;;  %943 = vmatprep.subr.bf16.mxu1 %v1023_v14 }
  0x41   : > { %886 = vmatpush3.bf16.msra.mxu0 %v1024_v15  ;;  %951 = vmatpush3.bf16.msra.mxu1 %v1024_v15  ;;  %v232_v15 = vld [vmem:[#allocation2 + $0x20] sm:$0xff] }
  0x42   : > { %887 = vmatprep.subr.bf16.mxu0 %v1025_v16  ;;  %944 = vmatprep.subr.bf16.mxu1 %v1025_v16 }
  0x45   : > { %888 = vmatpush3.bf16.msra.mxu0 %v1026_v17  ;;  %952 = vmatpush3.bf16.msra.mxu1 %v1026_v17 }
  0x48   : > { %501 = vmatmul.mubr.bf16.vlgmr.msra.gmra.mxu0 %v1027_v18  ;;  %533 = vmatmul.mubr.bf16.vlgmr.msra.gmra.mxu1 %v1030_v19  ;;  %v240_v19 = vld [vmem:[#allocation2 + $0x60] sm:$0xff] }
  0x49   : > { %508 = vmatprep.mubr.bf16.mxu0 %v1033_v20  ;;  %540 = vmatprep.mubr.bf16.mxu1 %v1035_v21 }
  0x50   : > { %509 = vmatmul.mubr.bf16.gmra.mxu0 %v1037_v22  ;;  %541 = vmatmul.mubr.bf16.gmra.mxu1 %v1038_v23 }
  0x51   : > { %516 = vmatprep.mubr.bf16.mxu0 %v1039_v24  ;;  %548 = vmatprep.mubr.bf16.mxu1 %v1041_v25 }
  0x58   : > { %517 = vmatmul.mubr.bf16.gmra.mxu0 %v1043_v26  ;;  %549 = vmatmul.mubr.bf16.gmra.mxu1 %v1044_v27 }
  0x59   : > { %524 = vmatprep.mubr.bf16.mxu0 %v1045_v28  ;;  %556 = vmatprep.mubr.bf16.mxu1 %v1047_v29  ;;  %v233_v29 = vld [vmem:[#allocation2 + $0x28] sm:$0xff] }
  0x60   : > { %525 = vmatmul.mubr.bf16.gmra.mxu0 %v1049_v30  ;;  %557 = vmatmul.mubr.bf16.gmra.mxu1 %v1050_v31 }
 0x108   : > { %v889_v33 = vpop.f32.mrf.mxu0  ;;  %v913_v34 = vpop.f32.mrf.mxu1 }
 0x10a   : > { %v890_v36 = vpop.f32.mrf.mxu0  ;;  %v914_v38 = vpop.f32.mrf.mxu1 }
 0x10b   : > { %v891_v39 = vadd.f32 %v890_v36, %v889_v33  ;;  %v915_v40 = vadd.f32 %v914_v38, %v913_v34  ;;  %v241_v33 = vld [vmem:[#allocation2 + $0x68] sm:$0xff] }
 0x10c   : > { %v892_v41 = vpop.f32.mrf.mxu0  ;;  %v916_v42 = vpop.f32.mrf.mxu1 }
 0x10d   : > { %v565_v43 = vadd.f32 %v891_v39, %v228_v35  ;;  %v573_v44 = vadd.f32 %v915_v40, %v236_v37 }
 0x10e   : > { %v893_v46 = vpop.f32.mrf.mxu0  ;;  %v917_v48 = vpop.f32.mrf.mxu1 }
 0x10f   : > { %582 = vst.msk [vmem:[#allocation2] sm:$0xff] %vm211_vm0, %v565_v43  ;;  %590 = vst.msk [vmem:[#allocation2 + $0x40] sm:$0xff] %vm211_vm0, %v573_v44  ;;  %v894_v49 = vadd.f32 %v893_v46, %v892_v41  ;;  %v918_v50 = vadd.f32 %v917_v48, %v916_v42  ;;  %v234_v43 = vld [vmem:[#allocation2 + $0x30] sm:$0xff] }
 0x110   : > { %v895_v51 = vpop.f32.mrf.mxu0  ;;  %v919_v52 = vpop.f32.mrf.mxu1 }
 0x111   : > { %v566_v53 = vadd.f32 %v894_v49, %v229_v45  ;;  %v574_v54 = vadd.f32 %v918_v50, %v237_v47  ;;  %v242_v47 = vld [vmem:[#allocation2 + $0x70] sm:$0xff] }
 0x112   : > { %v896_v56 = vpop.f32.mrf.mxu0  ;;  %v920_v58 = vpop.f32.mrf.mxu1 }
 0x113   : > { %583 = vst.msk [vmem:[#allocation2 + $0x8] sm:$0xff] %vm211_vm0, %v566_v53  ;;  %591 = vst.msk [vmem:[#allocation2 + $0x48] sm:$0xff] %vm211_vm0, %v574_v54  ;;  %v897_v59 = vadd.f32 %v896_v56, %v895_v51  ;;  %v921_v60 = vadd.f32 %v920_v58, %v919_v52 }
 0x114   : > { %v898_v61 = vpop.f32.mrf.mxu0  ;;  %v922_v62 = vpop.f32.mrf.mxu1 }
 0x115   : > { %v567_v63 = vadd.f32 %v897_v59, %v230_v55  ;;  %v575_v0 = vadd.f32 %v921_v60, %v238_v57  ;;  %v235_v57 = vld [vmem:[#allocation2 + $0x38] sm:$0xff] }
 0x116   : > { %v601_v2 = vld [vmem:[#allocation2] sm:$0xff]  ;;  %v899_v4 = vpop.f32.mrf.mxu0  ;;  %v923_v6 = vpop.f32.mrf.mxu1 }
 0x117   : > { %v609_v3 = vld [vmem:[#allocation2 + $0x40] sm:$0xff]  ;;  %v857_v7 = vpack.c.bf16 %v601_v2, %v601_v2  ;;  %584 = vst.msk [vmem:[#allocation2 + $0x10] sm:$0xff] %vm211_vm0, %v567_v63  ;;  %592 = vst.msk [vmem:[#allocation2 + $0x50] sm:$0xff] %vm211_vm0, %v575_v0  ;;  %v900_v9 = vadd.f32 %v899_v4, %v898_v61  ;;  %v924_v10 = vadd.f32 %v923_v6, %v922_v62  ;;  %v243_v61 = vld [vmem:[#allocation2 + $0x78] sm:$0xff] }
 0x118   : > { %v865_v8 = vpack.c.bf16 %v609_v3, %v609_v3  ;;  %v901_v11 = vpop.f32.mrf.mxu0  ;;  %v925_v12 = vpop.f32.mrf.mxu1 }
 0x119   : > { %682 = vst.msk [vmem:[%s1313_s7] sm:$0xf] %vm681_vm1, %v857_v7  ;;  %v568_v13 = vadd.f32 %v900_v9, %v231_v1  ;;  %v576_v14 = vadd.f32 %v924_v10, %v239_v5 }
 0x11a   : > { %690 = vst.msk [vmem:[%s1313_s7 + $0x20] sm:$0xf] %vm681_vm1, %v865_v8  ;;  %v602_v16 = vld [vmem:[#allocation2 + $0x8] sm:$0xff]  ;;  %v902_v18 = vpop.f32.mrf.mxu0  ;;  %v926_v20 = vpop.f32.mrf.mxu1 }
 0x11b   : > { %v610_v17 = vld [vmem:[#allocation2 + $0x48] sm:$0xff]  ;;  %v858_v21 = vpack.c.bf16 %v602_v16, %v602_v16  ;;  %585 = vst.msk [vmem:[#allocation2 + $0x18] sm:$0xff] %vm211_vm0, %v568_v13  ;;  %593 = vst.msk [vmem:[#allocation2 + $0x58] sm:$0xff] %vm211_vm0, %v576_v14  ;;  %v903_v23 = vadd.f32 %v902_v18, %v901_v11  ;;  %v927_v24 = vadd.f32 %v926_v20, %v925_v12 }
 0x11c   : > { %v866_v22 = vpack.c.bf16 %v610_v17, %v610_v17  ;;  %v904_v25 = vpop.f32.mrf.mxu0  ;;  %v928_v26 = vpop.f32.mrf.mxu1 }
 0x11d   : > { %683 = vst.msk [vmem:[%s1313_s7 + $0x4] sm:$0xf] %vm681_vm1, %v858_v21  ;;  %v569_v27 = vadd.f32 %v903_v23, %v232_v15  ;;  %v577_v28 = vadd.f32 %v927_v24, %v240_v19 }
 0x11e   : > { %691 = vst.msk [vmem:[%s1313_s7 + $0x24] sm:$0xf] %vm681_vm1, %v866_v22  ;;  %v603_v30 = vld [vmem:[#allocation2 + $0x10] sm:$0xff]  ;;  %v905_v32 = vpop.f32.mrf.mxu0  ;;  %v929_v34 = vpop.f32.mrf.mxu1 }
 0x11f   : > { %v611_v31 = vld [vmem:[#allocation2 + $0x50] sm:$0xff]  ;;  %v859_v35 = vpack.c.bf16 %v603_v30, %v603_v30  ;;  %586 = vst.msk [vmem:[#allocation2 + $0x20] sm:$0xff] %vm211_vm0, %v569_v27  ;;  %594 = vst.msk [vmem:[#allocation2 + $0x60] sm:$0xff] %vm211_vm0, %v577_v28  ;;  %v906_v37 = vadd.f32 %v905_v32, %v904_v25  ;;  %v930_v38 = vadd.f32 %v929_v34, %v928_v26 }
 0x120   : > { %v867_v36 = vpack.c.bf16 %v611_v31, %v611_v31  ;;  %v907_v39 = vpop.f32.mrf.mxu0  ;;  %v931_v40 = vpop.f32.mrf.mxu1 }
 0x121   : > { %684 = vst.msk [vmem:[%s1313_s7 + $0x8] sm:$0xf] %vm681_vm1, %v859_v35  ;;  %v570_v41 = vadd.f32 %v906_v37, %v233_v29  ;;  %v578_v42 = vadd.f32 %v930_v38, %v241_v33 }
 0x122   : > { %692 = vst.msk [vmem:[%s1313_s7 + $0x28] sm:$0xf] %vm681_vm1, %v867_v36  ;;  %v604_v44 = vld [vmem:[#allocation2 + $0x18] sm:$0xff]  ;;  %v908_v46 = vpop.f32.mrf.mxu0  ;;  %v932_v48 = vpop.f32.mrf.mxu1 }
 0x123   : > { %v612_v45 = vld [vmem:[#allocation2 + $0x58] sm:$0xff]  ;;  %v860_v49 = vpack.c.bf16 %v604_v44, %v604_v44  ;;  %587 = vst.msk [vmem:[#allocation2 + $0x28] sm:$0xff] %vm211_vm0, %v570_v41  ;;  %595 = vst.msk [vmem:[#allocation2 + $0x68] sm:$0xff] %vm211_vm0, %v578_v42  ;;  %v909_v51 = vadd.f32 %v908_v46, %v907_v39  ;;  %v933_v52 = vadd.f32 %v932_v48, %v931_v40 }
 0x124   : > { %v868_v50 = vpack.c.bf16 %v612_v45, %v612_v45  ;;  %v910_v53 = vpop.f32.mrf.mxu0  ;;  %v934_v54 = vpop.f32.mrf.mxu1 }
 0x125   : > { %685 = vst.msk [vmem:[%s1313_s7 + $0xc] sm:$0xf] %vm681_vm1, %v860_v49  ;;  %v571_v55 = vadd.f32 %v909_v51, %v234_v43  ;;  %v579_v56 = vadd.f32 %v933_v52, %v242_v47 }
 0x126   : > { %693 = vst.msk [vmem:[%s1313_s7 + $0x2c] sm:$0xf] %vm681_vm1, %v868_v50  ;;  %v605_v58 = vld [vmem:[#allocation2 + $0x20] sm:$0xff]  ;;  %v911_v60 = vpop.f32.mrf.mxu0  ;;  %v935_v62 = vpop.f32.mrf.mxu1 }
 0x127   : > { %v613_v59 = vld [vmem:[#allocation2 + $0x60] sm:$0xff]  ;;  %v861_v63 = vpack.c.bf16 %v605_v58, %v605_v58  ;;  %588 = vst.msk [vmem:[#allocation2 + $0x30] sm:$0xff] %vm211_vm0, %v571_v55  ;;  %596 = vst.msk [vmem:[#allocation2 + $0x70] sm:$0xff] %vm211_vm0, %v579_v56  ;;  %v912_v1 = vadd.f32 %v911_v60, %v910_v53  ;;  %v936_v2 = vadd.f32 %v935_v62, %v934_v54 }
 0x128   : > { %v869_v0 = vpack.c.bf16 %v613_v59, %v613_v59 }
 0x129   : > { %686 = vst.msk [vmem:[%s1313_s7 + $0x10] sm:$0xf] %vm681_vm1, %v861_v63  ;;  %v572_v3 = vadd.f32 %v912_v1, %v235_v57  ;;  %v580_v4 = vadd.f32 %v936_v2, %v243_v61 }
 0x12a   : > { %694 = vst.msk [vmem:[%s1313_s7 + $0x30] sm:$0xf] %vm681_vm1, %v869_v0  ;;  %v606_v5 = vld [vmem:[#allocation2 + $0x28] sm:$0xff] }
 0x12b   : > { %v614_v6 = vld [vmem:[#allocation2 + $0x68] sm:$0xff]  ;;  %v862_v7 = vpack.c.bf16 %v606_v5, %v606_v5  ;;  %589 = vst.msk [vmem:[#allocation2 + $0x38] sm:$0xff] %vm211_vm0, %v572_v3  ;;  %597 = vst.msk [vmem:[#allocation2 + $0x78] sm:$0xff] %vm211_vm0, %v580_v4 }
 0x12c   : > { %v870_v8 = vpack.c.bf16 %v614_v6, %v614_v6 }
 0x12d   : > { %687 = vst.msk [vmem:[%s1313_s7 + $0x14] sm:$0xf] %vm681_vm1, %v862_v7 }
 0x12e   : > { %695 = vst.msk [vmem:[%s1313_s7 + $0x34] sm:$0xf] %vm681_vm1, %v870_v8  ;;  %v607_v9 = vld [vmem:[#allocation2 + $0x30] sm:$0xff] }
 0x12f   : > { %v615_v10 = vld [vmem:[#allocation2 + $0x70] sm:$0xff]  ;;  %v863_v11 = vpack.c.bf16 %v607_v9, %v607_v9 }
 0x130   : > { %v871_v12 = vpack.c.bf16 %v615_v10, %v615_v10 }
 0x131   : > { %688 = vst.msk [vmem:[%s1313_s7 + $0x18] sm:$0xf] %vm681_vm1, %v863_v11 }
 0x132   : > { %696 = vst.msk [vmem:[%s1313_s7 + $0x38] sm:$0xf] %vm681_vm1, %v871_v12  ;;  %v608_v13 = vld [vmem:[#allocation2 + $0x38] sm:$0xff] }
 0x133   : > { %v616_v14 = vld [vmem:[#allocation2 + $0x78] sm:$0xff]  ;;  %v864_v15 = vpack.c.bf16 %v608_v13, %v608_v13 }
 0x134   : > { %v872_v16 = vpack.c.bf16 %v616_v14, %v616_v14 }
 0x135   : > { %689 = vst.msk [vmem:[%s1313_s7 + $0x1c] sm:$0xf] %vm681_vm1, %v864_v15 }
 0x136   : > { %697 = vst.msk [vmem:[%s1313_s7 + $0x3c] sm:$0xf] %vm681_vm1, %v872_v16 }
 0x137 PF: > { %s15_s14 = sadd.s32 1, %s1129_s14   ;;  %s1383_s9 = smov %s1113_s10 }
 0x138   : > { %p12_p8 = scmp.ge.s32.totalorder %s15_s14, 4   ;;  %s1384_s10 = smov %s1117_s11 }
 0x139   : > { %s1385_s11 = smov %s1199_s21  ;;  %s1386_s12 = smov %s1125_s13 }
 0x13a   : > { %s1387_s13 = smov %s1389_s16  ;;  %14 = sbr.rel (!%p12_p8) target bundleno = 4 (0x4), region = 79 }
 0x13f   :  { %720 = vsyncpa [#allocation4], 1 }
 0x140   :  { %722 = vsyncpa [#allocation4 + $0x1], 1 }

</bundles_post_ra>
